<compile_context>
chip_gen: v6e
topology: v6e:2x2x1
jax: 0.10.0
libtpu: 0.0.40
codegen_flags: <defaults>
</compile_context>

<pallas_src>
import functools

import jax
import jax.numpy as jnp
from jax import lax
from jax.experimental import pallas as pl
from jax.experimental.pallas import tpu as pltpu

HIDDEN = 256
LN_EPS = 1e-5  # torch.nn.LayerNorm default


def _round_up(x, m):
    return ((x + m - 1) // m) * m


def _cdiv(a, b):
    return -(-a // b)


def _layernorm(h, gamma, beta):
    """LayerNorm over the last dim, one-pass statistics (biased variance,
    matching torch): var = E[x^2] - mean^2. Both row reductions are
    independent, so neither XLU reduce waits on the other."""
    inv_n = 1.0 / h.shape[-1]
    s = jnp.sum(h, axis=-1, keepdims=True)
    sq = jnp.sum(h * h, axis=-1, keepdims=True)
    mean = s * inv_n
    var = jnp.maximum(sq * inv_n - mean * mean, 0.0)
    return (h - mean) * lax.rsqrt(var + LN_EPS) * gamma + beta


def _mish_fast(x):
    # mish(x) = x * tanh(softplus(x)).  With e = exp(x):
    #   tanh(log1p(e)) = (e*(e+2)) / (e*(e+2) + 2)
    # -> one EUP exp + one EUP approximate reciprocal, refined with a single
    # Newton step on the VPU (r <- r*(2 - d*r)) so precision is ~exact f32.
    xc = jnp.minimum(x, 20.0)            # exp(20) ~ 4.9e8, safely inside f32
    e = jnp.exp(xc)
    n = e * (e + 2.0)
    d = n + 2.0
    r = pl.reciprocal(d, approx=True)
    r = r * (2.0 - d * r)                # one Newton-Raphson refinement
    y = x * n * r
    return jnp.where(x > 20.0, x, y)     # mish(x) ~= x for large x


def v_kernel(obs_ref,
             w1_ref, b1_ref, g1_ref, be1_ref,
             w2_ref, b2_ref, g2_ref, be2_ref,
             w3_ref, b3_ref,
             out_ref):
    # bf16 operands into the MXU, f32 accumulation.
    x = obs_ref[...].astype(jnp.bfloat16)                     # (TB, obs_dim)

    # Linear 1 -> LayerNorm -> Mish
    h = jnp.dot(x, w1_ref[...], preferred_element_type=jnp.float32) + b1_ref[...]
    h = _layernorm(h, g1_ref[...], be1_ref[...])
    h = _mish_fast(h)

    # Linear 2 -> LayerNorm -> Mish
    h = jnp.dot(h.astype(jnp.bfloat16), w2_ref[...],
                preferred_element_type=jnp.float32) + b2_ref[...]
    h = _layernorm(h, g2_ref[...], be2_ref[...])
    h = _mish_fast(h)

    # Linear 3 (256 -> 1): f32 VPU multiply + one XLU cross-lane sum.
    v = jnp.sum(h * w3_ref[...], axis=-1, keepdims=True) + b3_ref[...]
    out_ref[...] = v.astype(out_ref.dtype)                     # (TB, 1)


def _pick_tile_b(batch, tile_b_max=512):
    """Adaptive batch tile: multiple of 8, no giant padding for tiny batches,
    >=2 grid steps whenever B >= 16 (v7x has 2 TensorCores), capped so per-step
    overhead is amortized without blowing up VMEM temporaries."""
    b8 = _round_up(max(int(batch), 1), 8)
    if b8 <= 8:
        return 8
    if b8 <= tile_b_max:
        return _round_up(_cdiv(b8, 2), 8)
    steps = max(_cdiv(b8, tile_b_max), 2)
    return _round_up(_cdiv(b8, steps), 8)


def v_forward(obs, params, *, tile_b=None):
    """obs: (B, obs_dim) float32. Returns (B, 1) float32."""
    B, obs_dim = obs.shape
    if tile_b is None:
        tile_b = _pick_tile_b(B)
    assert tile_b % 8 == 0, "tile_b must be a multiple of 8 (sublane)"
    (w1, b1, g1, be1, w2, b2, g2, be2, w3, b3) = params

    # bf16 weights for the MXU; cast once here (fused XLA convert), then kept
    # VMEM-resident across all grid steps via the constant index maps below.
    w1 = w1.astype(jnp.bfloat16)
    w2 = w2.astype(jnp.bfloat16)

    # Pad batch to a multiple of tile_b (zero rows are harmless, sliced off).
    B_pad = _round_up(B, tile_b)
    if B_pad != B:
        obs = jnp.pad(obs, ((0, B_pad - B), (0, 0)))

    grid = (B_pad // tile_b,)
    full = lambda shape: pl.BlockSpec(shape, lambda i: (0, 0))

    flops = 2 * B_pad * (obs_dim * HIDDEN + HIDDEN * HIDDEN + HIDDEN)
    # one exp + one approx recip per Mish element, rsqrt per LN row (advisory)
    transcendentals = 4 * B_pad * HIDDEN + 4 * B_pad
    bytes_accessed = (4 * B_pad * obs_dim                  # obs (f32)
                      + 2 * (obs_dim + HIDDEN) * HIDDEN    # w1, w2 (bf16)
                      + 4 * (7 * HIDDEN + 1)               # biases/LN/w3/b3
                      + 4 * B_pad)                         # output

    out = pl.pallas_call(
        v_kernel,
        out_shape=jax.ShapeDtypeStruct((B_pad, 1), jnp.float32),
        grid_spec=pltpu.PrefetchScalarGridSpec(
            num_scalar_prefetch=0,
            grid=grid,
            in_specs=[
                pl.BlockSpec((tile_b, obs_dim), lambda i: (i, 0)),  # obs tile
                full((obs_dim, HIDDEN)),  # w1 (bf16)
                full((1, HIDDEN)),        # b1
                full((1, HIDDEN)),        # ln1 gamma
                full((1, HIDDEN)),        # ln1 beta
                full((HIDDEN, HIDDEN)),   # w2 (bf16)
                full((1, HIDDEN)),        # b2
                full((1, HIDDEN)),        # ln2 gamma
                full((1, HIDDEN)),        # ln2 beta
                full((1, HIDDEN)),        # w3 as a (1, 256) row
                full((1, 1)),             # b3
            ],
            out_specs=pl.BlockSpec((tile_b, 1), lambda i: (i, 0)),
        ),
        compiler_params=pltpu.CompilerParams(
            dimension_semantics=("parallel",)),
        cost_estimate=pl.CostEstimate(
            flops=flops,
            transcendentals=transcendentals,
            bytes_accessed=bytes_accessed),
    )(obs, w1, b1, g1, be1, w2, b2, g2, be2, w3, b3)

    return out[:B]


def init_params(key, obs_dim):
    """Deterministic init mirroring torch defaults (uniform +-1/sqrt(fan_in)
    Linear, ones/zeros LayerNorm). w1/w2 stored as (in, out); w3 as (1, 256)."""
    ks = jax.random.split(key, 6)

    def linear(kw, kb, fan_in, fan_out):
        bound = 1.0 / jnp.sqrt(float(fan_in))
        w = jax.random.uniform(kw, (fan_in, fan_out), jnp.float32, -bound, bound)
        b = jax.random.uniform(kb, (1, fan_out), jnp.float32, -bound, bound)
        return w, b

    w1, b1 = linear(ks[0], ks[1], obs_dim, HIDDEN)
    w2, b2 = linear(ks[2], ks[3], HIDDEN, HIDDEN)
    bound3 = 1.0 / jnp.sqrt(float(HIDDEN))
    w3 = jax.random.uniform(ks[4], (1, HIDDEN), jnp.float32, -bound3, bound3)
    b3 = jax.random.uniform(ks[5], (1, 1), jnp.float32, -bound3, bound3)
    g1 = jnp.ones((1, HIDDEN), jnp.float32)
    be1 = jnp.zeros((1, HIDDEN), jnp.float32)
    g2 = jnp.ones((1, HIDDEN), jnp.float32)
    be2 = jnp.zeros((1, HIDDEN), jnp.float32)
    return (w1, b1, g1, be1, w2, b2, g2, be2, w3, b3)


def _mish_ref(x):
    # Standard (torch-semantics) mish: x * tanh(softplus(x)), stable softplus.
    sp = jnp.maximum(x, 0.0) + jnp.log1p(jnp.exp(-jnp.abs(x)))
    return x * jnp.tanh(sp)


def v_reference(obs, params, *, matmul_dtype=jnp.float32):
    """Pure-JAX reference.  matmul_dtype=jnp.bfloat16 matches the kernel's
    MXU precision; float32 is the exact torch-semantics forward."""
    (w1, b1, g1, be1, w2, b2, g2, be2, w3, b3) = params

    def mm(a, b):
        return jnp.dot(a.astype(matmul_dtype), b.astype(matmul_dtype),
                       preferred_element_type=jnp.float32)

    h = mm(obs, w1) + b1
    h = _layernorm(h, g1, be1)
    h = _mish_ref(h)
    h = mm(h, w2) + b2
    h = _layernorm(h, g2, be2)
    h = _mish_ref(h)
    return jnp.sum(h * w3, axis=-1, keepdims=True) + b3


if __name__ == "__main__":
    obs_dim = 32
    batch = 24   # not a multiple of the tile -> exercises padding + 2-step grid

    key = jax.random.PRNGKey(0)
    k_obs, k_par = jax.random.split(key)
    obs = jax.random.normal(k_obs, (batch, obs_dim), jnp.float32)
    params = init_params(k_par, obs_dim)

    run = jax.jit(v_forward)
    v = run(obs, params)
    jax.block_until_ready(v)

    assert v.shape == (batch, 1)

    # Tight check against a matched-precision (bf16-matmul) reference.
    v_ref_bf16 = v_reference(obs, params, matmul_dtype=jnp.bfloat16)
    assert jnp.allclose(v, v_ref_bf16, atol=1e-3, rtol=1e-3), (v, v_ref_bf16)

    # Loose check against the exact f32 torch-semantics forward (bf16 MXU
    # operand rounding accounts for the gap).
    v_ref_f32 = v_reference(obs, params, matmul_dtype=jnp.float32)
    assert jnp.allclose(v, v_ref_f32, atol=5e-2, rtol=5e-2), (v, v_ref_f32)

    print("KERNEL_OK")
</pallas_src>

<mosaic_0001>
module attributes {stable_mosaic.version = 11 : i64} {
  func.func @v_kernel(%arg0: i32, %arg1: memref<16x32xf32, #tpu.memory_space<vmem>>, %arg2: memref<32x256xbf16, #tpu.memory_space<vmem>>, %arg3: memref<1x256xf32, #tpu.memory_space<vmem>>, %arg4: memref<1x256xf32, #tpu.memory_space<vmem>>, %arg5: memref<1x256xf32, #tpu.memory_space<vmem>>, %arg6: memref<256x256xbf16, #tpu.memory_space<vmem>>, %arg7: memref<1x256xf32, #tpu.memory_space<vmem>>, %arg8: memref<1x256xf32, #tpu.memory_space<vmem>>, %arg9: memref<1x256xf32, #tpu.memory_space<vmem>>, %arg10: memref<1x256xf32, #tpu.memory_space<vmem>>, %arg11: memref<1x1xf32, #tpu.memory_space<vmem>>, %arg12: memref<16x1xf32, #tpu.memory_space<vmem>>) attributes {dimension_semantics = [#tpu.dimension_semantics<parallel>], iteration_bounds = array<i64: 2>, scalar_prefetch = 0 : i64, scratch_operands = 0 : i64, tpu.core_type = #tpu.core_type<tc>, window_params = [{transform_indices = @transform_0, window_bounds = array<i64: 16, 32>}, {pipeline_mode = #tpu.pipeline_mode<synchronous>, transform_indices = @transform_1, window_bounds = array<i64: 32, 256>}, {pipeline_mode = #tpu.pipeline_mode<synchronous>, transform_indices = @transform_2, window_bounds = array<i64: 1, 256>}, {pipeline_mode = #tpu.pipeline_mode<synchronous>, transform_indices = @transform_3, window_bounds = array<i64: 1, 256>}, {pipeline_mode = #tpu.pipeline_mode<synchronous>, transform_indices = @transform_4, window_bounds = array<i64: 1, 256>}, {pipeline_mode = #tpu.pipeline_mode<synchronous>, transform_indices = @transform_5, window_bounds = array<i64: 256, 256>}, {pipeline_mode = #tpu.pipeline_mode<synchronous>, transform_indices = @transform_6, window_bounds = array<i64: 1, 256>}, {pipeline_mode = #tpu.pipeline_mode<synchronous>, transform_indices = @transform_7, window_bounds = array<i64: 1, 256>}, {pipeline_mode = #tpu.pipeline_mode<synchronous>, transform_indices = @transform_8, window_bounds = array<i64: 1, 256>}, {pipeline_mode = #tpu.pipeline_mode<synchronous>, transform_indices = @transform_9, window_bounds = array<i64: 1, 256>}, {pipeline_mode = #tpu.pipeline_mode<synchronous>, transform_indices = @transform_10, window_bounds = array<i64: 1, 1>}, {transform_indices = @transform_11, window_bounds = array<i64: 16, 1>}]} {
    %c0 = arith.constant 0 : index
    %c0_0 = arith.constant 0 : index
    %0 = vector.load %arg1[%c0, %c0_0] : memref<16x32xf32, #tpu.memory_space<vmem>>, vector<16x32xf32>
    %1 = arith.truncf %0 : vector<16x32xf32> to vector<16x32xbf16>
    %c0_1 = arith.constant 0 : index
    %c0_2 = arith.constant 0 : index
    %2 = vector.load %arg2[%c0_1, %c0_2] : memref<32x256xbf16, #tpu.memory_space<vmem>>, vector<32x256xbf16>
    %cst = arith.constant dense<0.000000e+00> : vector<16x256xf32>
    %3 = tpu.matmul %1, %2, %cst {dimension_numbers = #tpu.dot_dimension_numbers<[1], [0], [0], [1], [0, 0, 1, 1], [], []>} : vector<16x32xbf16>, vector<32x256xbf16>, vector<16x256xf32> -> vector<16x256xf32>
    %c0_3 = arith.constant 0 : index
    %c0_4 = arith.constant 0 : index
    %4 = vector.load %arg3[%c0_3, %c0_4] : memref<1x256xf32, #tpu.memory_space<vmem>>, vector<1x256xf32>
    %5 = vector.broadcast %4 : vector<1x256xf32> to vector<16x256xf32>
    %6 = arith.addf %3, %5 : vector<16x256xf32>
    %c0_5 = arith.constant 0 : index
    %c0_6 = arith.constant 0 : index
    %7 = vector.load %arg4[%c0_5, %c0_6] : memref<1x256xf32, #tpu.memory_space<vmem>>, vector<1x256xf32>
    %c0_7 = arith.constant 0 : index
    %c0_8 = arith.constant 0 : index
    %8 = vector.load %arg5[%c0_7, %c0_8] : memref<1x256xf32, #tpu.memory_space<vmem>>, vector<1x256xf32>
    %cst_9 = arith.constant dense<0.000000e+00> : vector<16xf32>
    %9 = vector.multi_reduction <add>, %6, %cst_9 [1] : vector<16x256xf32> to vector<16xf32>
    %10 = vector.shape_cast %9 : vector<16xf32> to vector<16x1xf32>
    %11 = arith.mulf %6, %6 : vector<16x256xf32>
    %cst_10 = arith.constant dense<0.000000e+00> : vector<16xf32>
    %12 = vector.multi_reduction <add>, %11, %cst_10 [1] : vector<16x256xf32> to vector<16xf32>
    %13 = vector.shape_cast %12 : vector<16xf32> to vector<16x1xf32>
    %cst_11 = arith.constant 3.906250e-03 : f32
    %14 = vector.broadcast %cst_11 : f32 to vector<16x1xf32>
    %15 = arith.mulf %10, %14 : vector<16x1xf32>
    %cst_12 = arith.constant 3.906250e-03 : f32
    %16 = vector.broadcast %cst_12 : f32 to vector<16x1xf32>
    %17 = arith.mulf %13, %16 : vector<16x1xf32>
    %18 = arith.mulf %15, %15 : vector<16x1xf32>
    %19 = arith.subf %17, %18 : vector<16x1xf32>
    %cst_13 = arith.constant 0.000000e+00 : f32
    %20 = vector.broadcast %cst_13 : f32 to vector<16x1xf32>
    %21 = arith.maximumf %19, %20 : vector<16x1xf32>
    %22 = vector.broadcast %15 : vector<16x1xf32> to vector<16x256xf32>
    %23 = arith.subf %6, %22 : vector<16x256xf32>
    %cst_14 = arith.constant 9.99999974E-6 : f32
    %24 = vector.broadcast %cst_14 : f32 to vector<16x1xf32>
    %25 = arith.addf %21, %24 : vector<16x1xf32>
    %26 = math.rsqrt %25 : vector<16x1xf32>
    %27 = vector.broadcast %26 : vector<16x1xf32> to vector<16x256xf32>
    %28 = arith.mulf %23, %27 : vector<16x256xf32>
    %29 = vector.broadcast %7 : vector<1x256xf32> to vector<16x256xf32>
    %30 = arith.mulf %28, %29 : vector<16x256xf32>
    %31 = vector.broadcast %8 : vector<1x256xf32> to vector<16x256xf32>
    %32 = arith.addf %30, %31 : vector<16x256xf32>
    %cst_15 = arith.constant 2.000000e+01 : f32
    %33 = vector.broadcast %cst_15 : f32 to vector<16x256xf32>
    %34 = arith.minimumf %32, %33 : vector<16x256xf32>
    %35 = math.exp %34 : vector<16x256xf32>
    %cst_16 = arith.constant 2.000000e+00 : f32
    %36 = vector.broadcast %cst_16 : f32 to vector<16x256xf32>
    %37 = arith.addf %35, %36 : vector<16x256xf32>
    %38 = arith.mulf %35, %37 : vector<16x256xf32>
    %cst_17 = arith.constant 2.000000e+00 : f32
    %39 = vector.broadcast %cst_17 : f32 to vector<16x256xf32>
    %40 = arith.addf %38, %39 : vector<16x256xf32>
    %41 = tpu.reciprocal %40 {approx = true} : vector<16x256xf32> -> vector<16x256xf32>
    %42 = arith.mulf %40, %41 : vector<16x256xf32>
    %cst_18 = arith.constant 2.000000e+00 : f32
    %43 = vector.broadcast %cst_18 : f32 to vector<16x256xf32>
    %44 = arith.subf %43, %42 : vector<16x256xf32>
    %45 = arith.mulf %41, %44 : vector<16x256xf32>
    %46 = arith.mulf %32, %38 : vector<16x256xf32>
    %47 = arith.mulf %46, %45 : vector<16x256xf32>
    %cst_19 = arith.constant 2.000000e+01 : f32
    %48 = vector.broadcast %cst_19 : f32 to vector<16x256xf32>
    %49 = arith.cmpf ogt, %32, %48 : vector<16x256xf32>
    %50 = arith.select %49, %32, %47 : vector<16x256xi1>, vector<16x256xf32>
    %51 = arith.truncf %50 : vector<16x256xf32> to vector<16x256xbf16>
    %c0_20 = arith.constant 0 : index
    %c0_21 = arith.constant 0 : index
    %52 = vector.load %arg6[%c0_20, %c0_21] : memref<256x256xbf16, #tpu.memory_space<vmem>>, vector<256x256xbf16>
    %cst_22 = arith.constant dense<0.000000e+00> : vector<16x256xf32>
    %53 = tpu.matmul %51, %52, %cst_22 {dimension_numbers = #tpu.dot_dimension_numbers<[1], [0], [0], [1], [0, 0, 1, 1], [], []>} : vector<16x256xbf16>, vector<256x256xbf16>, vector<16x256xf32> -> vector<16x256xf32>
    %c0_23 = arith.constant 0 : index
    %c0_24 = arith.constant 0 : index
    %54 = vector.load %arg7[%c0_23, %c0_24] : memref<1x256xf32, #tpu.memory_space<vmem>>, vector<1x256xf32>
    %55 = vector.broadcast %54 : vector<1x256xf32> to vector<16x256xf32>
    %56 = arith.addf %53, %55 : vector<16x256xf32>
    %c0_25 = arith.constant 0 : index
    %c0_26 = arith.constant 0 : index
    %57 = vector.load %arg8[%c0_25, %c0_26] : memref<1x256xf32, #tpu.memory_space<vmem>>, vector<1x256xf32>
    %c0_27 = arith.constant 0 : index
    %c0_28 = arith.constant 0 : index
    %58 = vector.load %arg9[%c0_27, %c0_28] : memref<1x256xf32, #tpu.memory_space<vmem>>, vector<1x256xf32>
    %cst_29 = arith.constant dense<0.000000e+00> : vector<16xf32>
    %59 = vector.multi_reduction <add>, %56, %cst_29 [1] : vector<16x256xf32> to vector<16xf32>
    %60 = vector.shape_cast %59 : vector<16xf32> to vector<16x1xf32>
    %61 = arith.mulf %56, %56 : vector<16x256xf32>
    %cst_30 = arith.constant dense<0.000000e+00> : vector<16xf32>
    %62 = vector.multi_reduction <add>, %61, %cst_30 [1] : vector<16x256xf32> to vector<16xf32>
    %63 = vector.shape_cast %62 : vector<16xf32> to vector<16x1xf32>
    %cst_31 = arith.constant 3.906250e-03 : f32
    %64 = vector.broadcast %cst_31 : f32 to vector<16x1xf32>
    %65 = arith.mulf %60, %64 : vector<16x1xf32>
    %cst_32 = arith.constant 3.906250e-03 : f32
    %66 = vector.broadcast %cst_32 : f32 to vector<16x1xf32>
    %67 = arith.mulf %63, %66 : vector<16x1xf32>
    %68 = arith.mulf %65, %65 : vector<16x1xf32>
    %69 = arith.subf %67, %68 : vector<16x1xf32>
    %cst_33 = arith.constant 0.000000e+00 : f32
    %70 = vector.broadcast %cst_33 : f32 to vector<16x1xf32>
    %71 = arith.maximumf %69, %70 : vector<16x1xf32>
    %72 = vector.broadcast %65 : vector<16x1xf32> to vector<16x256xf32>
    %73 = arith.subf %56, %72 : vector<16x256xf32>
    %cst_34 = arith.constant 9.99999974E-6 : f32
    %74 = vector.broadcast %cst_34 : f32 to vector<16x1xf32>
    %75 = arith.addf %71, %74 : vector<16x1xf32>
    %76 = math.rsqrt %75 : vector<16x1xf32>
    %77 = vector.broadcast %76 : vector<16x1xf32> to vector<16x256xf32>
    %78 = arith.mulf %73, %77 : vector<16x256xf32>
    %79 = vector.broadcast %57 : vector<1x256xf32> to vector<16x256xf32>
    %80 = arith.mulf %78, %79 : vector<16x256xf32>
    %81 = vector.broadcast %58 : vector<1x256xf32> to vector<16x256xf32>
    %82 = arith.addf %80, %81 : vector<16x256xf32>
    %cst_35 = arith.constant 2.000000e+01 : f32
    %83 = vector.broadcast %cst_35 : f32 to vector<16x256xf32>
    %84 = arith.minimumf %82, %83 : vector<16x256xf32>
    %85 = math.exp %84 : vector<16x256xf32>
    %cst_36 = arith.constant 2.000000e+00 : f32
    %86 = vector.broadcast %cst_36 : f32 to vector<16x256xf32>
    %87 = arith.addf %85, %86 : vector<16x256xf32>
    %88 = arith.mulf %85, %87 : vector<16x256xf32>
    %cst_37 = arith.constant 2.000000e+00 : f32
    %89 = vector.broadcast %cst_37 : f32 to vector<16x256xf32>
    %90 = arith.addf %88, %89 : vector<16x256xf32>
    %91 = tpu.reciprocal %90 {approx = true} : vector<16x256xf32> -> vector<16x256xf32>
    %92 = arith.mulf %90, %91 : vector<16x256xf32>
    %cst_38 = arith.constant 2.000000e+00 : f32
    %93 = vector.broadcast %cst_38 : f32 to vector<16x256xf32>
    %94 = arith.subf %93, %92 : vector<16x256xf32>
    %95 = arith.mulf %91, %94 : vector<16x256xf32>
    %96 = arith.mulf %82, %88 : vector<16x256xf32>
    %97 = arith.mulf %96, %95 : vector<16x256xf32>
    %cst_39 = arith.constant 2.000000e+01 : f32
    %98 = vector.broadcast %cst_39 : f32 to vector<16x256xf32>
    %99 = arith.cmpf ogt, %82, %98 : vector<16x256xf32>
    %100 = arith.select %99, %82, %97 : vector<16x256xi1>, vector<16x256xf32>
    %c0_40 = arith.constant 0 : index
    %c0_41 = arith.constant 0 : index
    %101 = vector.load %arg10[%c0_40, %c0_41] : memref<1x256xf32, #tpu.memory_space<vmem>>, vector<1x256xf32>
    %102 = vector.broadcast %101 : vector<1x256xf32> to vector<16x256xf32>
    %103 = arith.mulf %100, %102 : vector<16x256xf32>
    %cst_42 = arith.constant dense<0.000000e+00> : vector<16xf32>
    %104 = vector.multi_reduction <add>, %103, %cst_42 [1] : vector<16x256xf32> to vector<16xf32>
    %105 = vector.shape_cast %104 : vector<16xf32> to vector<16x1xf32>
    %c0_43 = arith.constant 0 : index
    %c0_44 = arith.constant 0 : index
    %106 = vector.load %arg11[%c0_43, %c0_44] : memref<1x1xf32, #tpu.memory_space<vmem>>, vector<1x1xf32>
    %107 = vector.broadcast %106 : vector<1x1xf32> to vector<16x1xf32>
    %108 = arith.addf %105, %107 : vector<16x1xf32>
    %c0_45 = arith.constant 0 : index
    %c0_46 = arith.constant 0 : index
    %109 = vector.load %arg12[%c0_45, %c0_46] : memref<16x1xf32, #tpu.memory_space<vmem>>, vector<16x1xf32>
    tpu.vector_store %arg12[%c0_45, %c0_46], %108 {strides = array<i32>} : memref<16x1xf32, #tpu.memory_space<vmem>>, vector<16x1xf32>,
    return
  }
  func.func @transform_0(%arg0: i32) -> (i32, i32) {
    %c0_i32 = arith.constant 0 : i32
    %c0_i32_0 = arith.constant 0 : i32
    return %arg0, %c0_i32 : i32, i32
  }
  func.func @transform_1(%arg0: i32) -> (i32, i32) {
    %c0_i32 = arith.constant 0 : i32
    %c0_i32_0 = arith.constant 0 : i32
    %c0_i32_1 = arith.constant 0 : i32
    return %c0_i32, %c0_i32_0 : i32, i32
  }
  func.func @transform_2(%arg0: i32) -> (i32, i32) {
    %c0_i32 = arith.constant 0 : i32
    %c0_i32_0 = arith.constant 0 : i32
    %c0_i32_1 = arith.constant 0 : i32
    return %c0_i32, %c0_i32_0 : i32, i32
  }
  func.func @transform_3(%arg0: i32) -> (i32, i32) {
    %c0_i32 = arith.constant 0 : i32
    %c0_i32_0 = arith.constant 0 : i32
    %c0_i32_1 = arith.constant 0 : i32
    return %c0_i32, %c0_i32_0 : i32, i32
  }
  func.func @transform_4(%arg0: i32) -> (i32, i32) {
    %c0_i32 = arith.constant 0 : i32
    %c0_i32_0 = arith.constant 0 : i32
    %c0_i32_1 = arith.constant 0 : i32
    return %c0_i32, %c0_i32_0 : i32, i32
  }
  func.func @transform_5(%arg0: i32) -> (i32, i32) {
    %c0_i32 = arith.constant 0 : i32
    %c0_i32_0 = arith.constant 0 : i32
    %c0_i32_1 = arith.constant 0 : i32
    return %c0_i32, %c0_i32_0 : i32, i32
  }
  func.func @transform_6(%arg0: i32) -> (i32, i32) {
    %c0_i32 = arith.constant 0 : i32
    %c0_i32_0 = arith.constant 0 : i32
    %c0_i32_1 = arith.constant 0 : i32
    return %c0_i32, %c0_i32_0 : i32, i32
  }
  func.func @transform_7(%arg0: i32) -> (i32, i32) {
    %c0_i32 = arith.constant 0 : i32
    %c0_i32_0 = arith.constant 0 : i32
    %c0_i32_1 = arith.constant 0 : i32
    return %c0_i32, %c0_i32_0 : i32, i32
  }
  func.func @transform_8(%arg0: i32) -> (i32, i32) {
    %c0_i32 = arith.constant 0 : i32
    %c0_i32_0 = arith.constant 0 : i32
    %c0_i32_1 = arith.constant 0 : i32
    return %c0_i32, %c0_i32_0 : i32, i32
  }
  func.func @transform_9(%arg0: i32) -> (i32, i32) {
    %c0_i32 = arith.constant 0 : i32
    %c0_i32_0 = arith.constant 0 : i32
    %c0_i32_1 = arith.constant 0 : i32
    return %c0_i32, %c0_i32_0 : i32, i32
  }
  func.func @transform_10(%arg0: i32) -> (i32, i32) {
    %c0_i32 = arith.constant 0 : i32
    %c0_i32_0 = arith.constant 0 : i32
    %c0_i32_1 = arith.constant 0 : i32
    return %c0_i32, %c0_i32_0 : i32, i32
  }
  func.func @transform_11(%arg0: i32) -> (i32, i32) {
    %c0_i32 = arith.constant 0 : i32
    %c0_i32_0 = arith.constant 0 : i32
    return %arg0, %c0_i32 : i32, i32
  }
}

</mosaic_0001>

<bundles_post_ra>
// kernel: v_forward.1
= control target key start
LH: loop header
LB: loop body
LE: loop exit
PB: predicated region body
PF: predicated region fallthrough
CT: control target
= control target key end

     0   :  { %s1294_s19 = smov 0   ;;  %s1525_s0 = inlined_call_operand.vmem [shape: f32[32,32], index: 0, kind: input, shape index: {}]   ;;  %s1526_s1 = inlined_call_operand.vmem [shape: bf16[32,256], index: 1, kind: input, shape index: {}]   ;;  %s1527_s2 = inlined_call_operand.vmem [shape: f32[1,256], index: 2, kind: input, shape index: {}]   ;;  %s1528_s3 = inlined_call_operand.vmem [shape: f32[1,256], index: 3, kind: input, shape index: {}]   ;;  %s1529_s4 = inlined_call_operand.vmem [shape: f32[1,256], index: 4, kind: input, shape index: {}]   ;;  %s1530_s5 = inlined_call_operand.vmem [shape: bf16[256,256], index: 5, kind: input, shape index: {}]   ;;  %s1531_s6 = inlined_call_operand.vmem [shape: f32[1,256], index: 6, kind: input, shape index: {}]   ;;  %s1532_s7 = inlined_call_operand.vmem [shape: f32[1,256], index: 7, kind: input, shape index: {}]   ;;  %s1533_s8 = inlined_call_operand.vmem [shape: f32[1,256], index: 8, kind: input, shape index: {}]   ;;  %s1534_s9 = inlined_call_operand.vmem [shape: f32[1,256], index: 9, kind: input, shape index: {}]   ;;  %s1535_s10 = inlined_call_operand.<no memory space> [shape: f32[1,1], index: 10, kind: input, shape index: {}]   ;;  %s1536_s11 = inlined_call_operand.vmem [shape: f32[32,1], index: 11, kind: output, shape index: {}]  }
   0x1   :  { %v16_v0 = vstv %s1535_s10 }
   0x2   :  { %17 = vst [vmem:[#allocation2] sm:$0x1] %v16_v0 }
   0x3 LB: > { %s1070_s20 = sadd.s32 4294967295, %s1228_s19   ;;  %p1074_p0 = scmp.ge.s32.totalorder %s1228_s19, 1  ;;  %s1228_s19 = sphi %s1294_s19, %s23_s19  }
   0x4   : > { %p340_p1 = scmp.lt.s32.totalorder %s1228_s19, 3 }
   0x6   : > { %p341_p2 = pnand %p1074_p0, %p340_p1 }
   0x7   : > { %s1075_s10 = sshll.u32 (!%p341_p2), %s1070_s20, 1 }
   0x8   : > { %344 = sbr.rel (%p341_p2) target bundleno = 1009 (0x3f1), region = 64  ;;  %p381_p3 = scmp.lt.s32.totalorder (!%p341_p2), %s1075_s10, 3 }
   0xd   : > { %v1128_v1 = vld [vmem:[%s1526_s1 + $0x14] ss:$8 sps:$4 sm:$0xff]   ;;  %v1130_v2 = vld [vmem:[%s1526_s1 + $0x10] ss:$8 sps:$4 sm:$0xff]   ;;  %v1230_v3 = vmov 0   ;;  %s1538_s10 = smov (!%p381_p3, %s1075_s10), 3  ;;  %v402_v9 = vlaneseq }
   0xe   : > { %468 = vmatprep.mubr.bf16.mxu0 %v1230_v3  ;;  %448 = vmatprep.subr.bf16.mxu0 %v1128_v1  ;;  %v1131_v4 = vld [vmem:[%s1526_s1 + $0x4] ss:$8 sps:$4 sm:$0xff]   ;;  %v1133_v5 = vld [vmem:[%s1526_s1] ss:$8 sps:$4 sm:$0xff]   ;;  %s1076_s29 = sshll.u32 %s1538_s10, 3  ;;  %vm432_vm0 = vcmask 261120  }
   0xf   : > { %449 = vmatpush1.bf16.msra.mxu0 %v1130_v2  ;;  %s384_s13 = scalar_lea.vmem %s1525_s0, %s1076_s29  ;;  %v403_v10 = vshrl.u32 %v402_v9, 7  ;;  %v400_v12 = vld [vmem:[%s1527_s2] sm:$0x3]  ;;  %v1134_v32 = vld [vmem:[%s1530_s5 + $0x74] ss:$8 sps:$4 sm:$0xff]   ;;  %s390_s27 = scalar_lea.vmem %s1536_s11, %s1076_s29  ;;  %vm1011_vm9 = vcmask 7168  }
  0x10   : > { %450 = vmatprep.subr.bf16.mxu0 %v1131_v4  ;;  %v393_v6 = vld [vmem:[%s384_s13] sm:$0xff]  ;;  %v394_v7 = vld [vmem:[%s384_s13 + $0x8] sm:$0xff]  ;;  %v1136_v33 = vld [vmem:[%s1530_s5 + $0x70] ss:$8 sps:$4 sm:$0xff]   ;;  %811 = vmatprep.subr.bf16.mxu1 %v1134_v32 }
  0x11   : > { %v395_v8 = vpack.c.bf16 %v394_v7, %v393_v6  ;;  %v1322_v11 = vsub.s32 0, %v403_v10  ;;  %v1327_v13 = vsub.s32 1, %v403_v10  ;;  %v1137_v34 = vld [vmem:[%s1530_s5 + $0x64] ss:$8 sps:$4 sm:$0xff]   ;;  %812 = vmatpush1.bf16.msra.mxu1 %v1136_v33  ;;  %v1139_v35 = vld [vmem:[%s1530_s5 + $0x60] ss:$8 sps:$4 sm:$0xff]  }
  0x12   : > { %813 = vmatprep.subr.bf16.mxu1 %v1137_v34  ;;  %v1140_v36 = vld [vmem:[%s1530_s5 + $0x54] ss:$8 sps:$4 sm:$0xff]   ;;  %v1142_v37 = vld [vmem:[%s1530_s5 + $0x50] ss:$8 sps:$4 sm:$0xff]   ;;  %v1143_v38 = vld [vmem:[%s1530_s5 + $0x44] ss:$8 sps:$4 sm:$0xff]  }
  0x13   : > { %451 = vmatpush1.bf16.msra.mxu0 %v1133_v5  ;;  %v405_v14 = vrot.slane %v400_v12, %v1322_v11  ;;  %v409_v15 = vrot.slane %v400_v12, %v1327_v13  ;;  %v1145_v39 = vld [vmem:[%s1530_s5 + $0x40] ss:$8 sps:$4 sm:$0xff]   ;;  %v1146_v40 = vld [vmem:[%s1530_s5 + $0x34] ss:$8 sps:$4 sm:$0xff]   ;;  %v1148_v41 = vld [vmem:[%s1530_s5 + $0x30] ss:$8 sps:$4 sm:$0xff]  }
  0x14   : > { %v1149_v42 = vld [vmem:[%s1530_s5 + $0x24] ss:$8 sps:$4 sm:$0xff]   ;;  %v1151_v43 = vld [vmem:[%s1530_s5 + $0x20] ss:$8 sps:$4 sm:$0xff]   ;;  %v1152_v44 = vld [vmem:[%s1530_s5 + $0x14] ss:$8 sps:$4 sm:$0xff]  }
  0x15   : > { %814 = vmatpush1.bf16.msra.mxu1 %v1139_v35  ;;  %v1154_v45 = vld [vmem:[%s1530_s5 + $0x10] ss:$8 sps:$4 sm:$0xff]   ;;  %v1155_v46 = vld [vmem:[%s1530_s5 + $0x4] ss:$8 sps:$4 sm:$0xff]   ;;  %v1157_v47 = vld [vmem:[%s1530_s5] ss:$8 sps:$4 sm:$0xff]  }
  0x16   : > { %1083 = vmatmul.mubr.msk.bf16.vlgmr.msra.gmra.mxu0 %vm432_vm0, %v395_v8  ;;  %815 = vmatprep.subr.bf16.mxu1 %v1140_v36  ;;  %v1158_v48 = vld [vmem:[%s1530_s5 + $0xf4] ss:$8 sps:$4 sm:$0xff]   ;;  %v1160_v49 = vld [vmem:[%s1530_s5 + $0xf0] ss:$8 sps:$4 sm:$0xff]   ;;  %v1161_v50 = vld [vmem:[%s1530_s5 + $0xe4] ss:$8 sps:$4 sm:$0xff]  }
  0x17   : > { %v1163_v51 = vld [vmem:[%s1530_s5 + $0xe0] ss:$8 sps:$4 sm:$0xff]   ;;  %v1164_v52 = vld [vmem:[%s1530_s5 + $0xd4] ss:$8 sps:$4 sm:$0xff]   ;;  %v1166_v53 = vld [vmem:[%s1530_s5 + $0xd0] ss:$8 sps:$4 sm:$0xff]  }
  0x18   : > { %v1167_v54 = vld [vmem:[%s1530_s5 + $0xc4] ss:$8 sps:$4 sm:$0xff]   ;;  %v1169_v55 = vld [vmem:[%s1530_s5 + $0xc0] ss:$8 sps:$4 sm:$0xff]   ;;  %v1170_v56 = vld [vmem:[%s1530_s5 + $0xb4] ss:$8 sps:$4 sm:$0xff]  }
  0x19   : > { %816 = vmatpush1.bf16.msra.mxu1 %v1142_v37  ;;  %v1172_v57 = vld [vmem:[%s1530_s5 + $0xb0] ss:$8 sps:$4 sm:$0xff]   ;;  %v1173_v58 = vld [vmem:[%s1530_s5 + $0xa4] ss:$8 sps:$4 sm:$0xff]   ;;  %v1175_v59 = vld [vmem:[%s1530_s5 + $0xa0] ss:$8 sps:$4 sm:$0xff]  }
  0x1a   : > { %817 = vmatprep.subr.bf16.mxu1 %v1143_v38  ;;  %v1176_v60 = vld [vmem:[%s1530_s5 + $0x94] ss:$8 sps:$4 sm:$0xff]   ;;  %v1178_v61 = vld [vmem:[%s1530_s5 + $0x90] ss:$8 sps:$4 sm:$0xff]   ;;  %v1179_v62 = vld [vmem:[%s1530_s5 + $0x84] ss:$8 sps:$4 sm:$0xff]  }
  0x1b   : > { %v1181_v63 = vld [vmem:[%s1530_s5 + $0x80] ss:$8 sps:$4 sm:$0xff]  }
  0x1d   : > { %818 = vmatpush1.bf16.msra.mxu1 %v1145_v39 }
  0x1e   : > { %819 = vmatprep.subr.bf16.mxu1 %v1146_v40 }
  0x21   : > { %820 = vmatpush1.bf16.msra.mxu1 %v1148_v41 }
  0x22   : > { %821 = vmatprep.subr.bf16.mxu1 %v1149_v42 }
  0x25   : > { %822 = vmatpush1.bf16.msra.mxu1 %v1151_v43 }
  0x26   : > { %823 = vmatprep.subr.bf16.mxu1 %v1152_v44 }
  0x29   : > { %824 = vmatpush1.bf16.msra.mxu1 %v1154_v45 }
  0x2a   : > { %825 = vmatprep.subr.bf16.mxu1 %v1155_v46 }
  0x2d   : > { %826 = vmatpush1.bf16.msra.mxu1 %v1157_v47 }
  0x2e   : > { %827 = vmatprep.subr.bf16.mxu1 %v1158_v48 }
  0x31   : > { %828 = vmatpush2.bf16.msra.mxu1 %v1160_v49 }
  0x32   : > { %829 = vmatprep.subr.bf16.mxu1 %v1161_v50 }
  0x35   : > { %830 = vmatpush2.bf16.msra.mxu1 %v1163_v51 }
  0x36   : > { %831 = vmatprep.subr.bf16.mxu1 %v1164_v52 }
  0x39   : > { %832 = vmatpush2.bf16.msra.mxu1 %v1166_v53 }
  0x3a   : > { %833 = vmatprep.subr.bf16.mxu1 %v1167_v54 }
  0x3d   : > { %834 = vmatpush2.bf16.msra.mxu1 %v1169_v55 }
  0x3e   : > { %835 = vmatprep.subr.bf16.mxu1 %v1170_v56 }
  0x41   : > { %836 = vmatpush2.bf16.msra.mxu1 %v1172_v57 }
  0x42   : > { %837 = vmatprep.subr.bf16.mxu1 %v1173_v58 }
  0x45   : > { %838 = vmatpush2.bf16.msra.mxu1 %v1175_v59 }
  0x46   : > { %839 = vmatprep.subr.bf16.mxu1 %v1176_v60 }
  0x49   : > { %840 = vmatpush2.bf16.msra.mxu1 %v1178_v61 }
  0x4a   : > { %841 = vmatprep.subr.bf16.mxu1 %v1179_v62 }
  0x4d   : > { %842 = vmatpush2.bf16.msra.mxu1 %v1181_v63 }
  0xd6   : > { %v470_v16 = vpop.f32.mrf.mxu0 }
  0xd7   : > { %v1331_v17 = vadd.f32 %v470_v16, %v405_v14 }
  0xd8   : > { %v472_v18 = vpop.f32.mrf.mxu0 }
  0xd9   : > { %v1333_v19 = vadd.f32 %v472_v18, %v409_v15  ;;  %v487_v23 = vmul.f32 %v1331_v17, %v1331_v17 }
  0xda   : > { %v474_v20 = vpop.f32.mrf.mxu0 }
  0xdb   : > { %v1335_v21 = vadd.f32 %v474_v20, %v405_v14  ;;  %v481_v22 = vadd.f32 %v1333_v19, %v1331_v17  ;;  %v488_v24 = vmul.f32 %v1333_v19, %v1333_v19  ;;  %v479_v20 = vld [vmem:[%s1528_s3] sm:$0x3] }
  0xdc   : > { %v476_v25 = vpop.f32.mrf.mxu0 }
  0xdd   : > { %v1343_v26 = vadd.f32 %v476_v25, %v409_v15  ;;  %482 = vadd.xlane.f32.xlu0 %v481_v22  ;;  %v491_v27 = vadd.f32 %v488_v24, %v487_v23  ;;  %v489_v29 = vmul.f32 %v1335_v21, %v1335_v21  ;;  %v480_v22 = vld [vmem:[%s1529_s4] sm:$0x3]  ;;  %v523_v25 = vrot.slane %v479_v20, %v1322_v11 }
  0xdf   : > { %492 = vadd.xlane.f32.xlu1 %v491_v27  ;;  %v484_v28 = vadd.f32 %v1343_v26, %v1335_v21  ;;  %v490_v30 = vmul.f32 %v1343_v26, %v1343_v26  ;;  %v527_v27 = vrot.slane %v479_v20, %v1327_v13 }
  0xe1   : > { %485 = vadd.xlane.f32.xlu0 %v484_v28  ;;  %v494_v31 = vadd.f32 %v490_v30, %v489_v29  ;;  %v538_v30 = vrot.slane %v480_v22, %v1322_v11 }
  0xe3   : > { %495 = vadd.xlane.f32.xlu1 %v494_v31  ;;  %v542_v31 = vrot.slane %v480_v22, %v1327_v13 }
 0x166   : > { %v483_v0 = vpop.xlane.xlu0 %482 }
 0x167   : > { %v497_v1 = vmul.f32 0.00390625, %v483_v0 }
 0x168   : > { %v493_v2 = vpop.xlane.xlu1 %492 }
 0x169   : > { %v499_v3 = vmul.f32 0.00390625, %v493_v2  ;;  %v501_v4 = vmul.f32 %v497_v1, %v497_v1  ;;  %v507_v23 = vsub.f32 %v1331_v17, %v497_v1  ;;  %v508_v24 = vsub.f32 %v1333_v19, %v497_v1 }
 0x16a   : > { %v486_v5 = vpop.xlane.xlu0 %485 }
 0x16b   : > { %v503_v6 = vsub.f32 %v499_v3, %v501_v4  ;;  %v498_v7 = vmul.f32 0.00390625, %v486_v5 }
 0x16c   : > { %v496_v8 = vpop.xlane.xlu1 %495 }
 0x16d   : > { %v505_v9 = vmax.f32 %v503_v6, 0.0  ;;  %v500_v10 = vmul.f32 0.00390625, %v496_v8  ;;  %v502_v12 = vmul.f32 %v498_v7, %v498_v7  ;;  %v509_v35 = vsub.f32 %v1335_v21, %v498_v7 }
 0x16e   : > { %v510_v36 = vsub.f32 %v1343_v26, %v498_v7 }
 0x16f   : > { %v511_v14 = vadd.f32 1e-05, %v505_v9  ;;  %v504_v15 = vsub.f32 %v500_v10, %v502_v12 }
 0x171   : > { %1182 = vrsqrt.f32 %v511_v14  ;;  %v506_v16 = vmax.f32 %v504_v15, 0.0 }
 0x173   : > { %v512_v18 = vadd.f32 1e-05, %v506_v16 }
 0x175   : > { %1184 = vrsqrt.f32 %v512_v18 }
 0x17e   : > { %v1183_v28 = vpop.eup %1182 }
 0x17f   : > { %v516_v29 = vmul.f32 %v1183_v28, %v508_v24  ;;  %v515_v32 = vmul.f32 %v1183_v28, %v507_v23 }
 0x181   : > { %v531_v33 = vmul.f32 %v527_v27, %v516_v29  ;;  %v530_v34 = vmul.f32 %v523_v25, %v515_v32 }
 0x182   : > { %v1185_v17 = vpop.eup %1184 }
 0x183   : > { %v1461_v37 = vadd.f32 %v542_v31, %v531_v33  ;;  %v1463_v19 = vadd.f32 %v538_v30, %v530_v34  ;;  %v518_v38 = vmul.f32 %v1185_v17, %v510_v36  ;;  %v517_v39 = vmul.f32 %v1185_v17, %v509_v35 }
 0x185   : > { %v550_v40 = vmin.f32 %v1461_v37, 20.0  ;;  %v549_v41 = vmin.f32 %v1463_v19, 20.0  ;;  %v533_v42 = vmul.f32 %v527_v27, %v518_v38  ;;  %v532_v43 = vmul.f32 %v523_v25, %v517_v39  ;;  %v639_v38 = vld [vmem:[%s1531_s6] sm:$0x3] }
 0x186   : > { %vm598_vm1 = vcmp.gt.f32.partialorder %v1461_v37, 20.0  ;;  %vm597_vm3 = vcmp.gt.f32.partialorder %v1463_v19, 20.0  ;;  %v644_v39 = vrot.slane %v639_v38, %v1322_v11 }
 0x187   : > { %v555_v44 = vmul.f32 1.442695, %v550_v40  ;;  %v553_v45 = vmul.f32 1.442695, %v549_v41  ;;  %v548_v46 = vadd.f32 %v542_v31, %v533_v42  ;;  %v547_v47 = vadd.f32 %v538_v30, %v532_v43 }
 0x188   : > { %v648_v40 = vrot.slane %v639_v38, %v1327_v13 }
 0x189   : > { %1186 = vpow2.f32 %v555_v44  ;;  %v552_v21 = vmin.f32 %v548_v46, 20.0  ;;  %v551_v26 = vmin.f32 %v547_v47, 20.0  ;;  %vm600_vm2 = vcmp.gt.f32.partialorder %v548_v46, 20.0 }
 0x18a   : > { %1188 = vpow2.f32 %v553_v45  ;;  %vm599_vm4 = vcmp.gt.f32.partialorder %v547_v47, 20.0 }
 0x18b   : > { %v559_v48 = vmul.f32 1.442695, %v552_v21  ;;  %v557_v49 = vmul.f32 1.442695, %v551_v26 }
 0x18d   : > { %1190 = vpow2.f32 %v559_v48 }
 0x18e   : > { %1192 = vpow2.f32 %v557_v49 }
 0x196   : > { %v1187_v50 = vpop.eup %1186 }
 0x197   : > { %v1189_v51 = vpop.eup %1188  ;;  %v562_v52 = vadd.f32 2.0, %v1187_v50 }
 0x198   : > { %v561_v53 = vadd.f32 2.0, %v1189_v51 }
 0x199   : > { %v566_v54 = vmul.f32 %v1187_v50, %v562_v52 }
 0x19a   : > { %v565_v55 = vmul.f32 %v1189_v51, %v561_v53  ;;  %v1191_v56 = vpop.eup %1190 }
 0x19b   : > { %v570_v57 = vadd.f32 2.0, %v566_v54  ;;  %v1193_v58 = vpop.eup %1192  ;;  %v564_v59 = vadd.f32 2.0, %v1191_v56  ;;  %v590_v18 = vmul.f32 %v566_v54, %v1461_v37 }
 0x19c   : > { %v569_v60 = vadd.f32 2.0, %v565_v55  ;;  %v563_v61 = vadd.f32 2.0, %v1193_v58  ;;  %v589_v22 = vmul.f32 %v565_v55, %v1463_v19 }
 0x19d   : > { %1194 = vrcp.f32 %v570_v57  ;;  %v568_v62 = vmul.f32 %v1191_v56, %v564_v59 }
 0x19e   : > { %1196 = vrcp.f32 %v569_v60  ;;  %v567_v63 = vmul.f32 %v1193_v58, %v563_v61 }
 0x19f   : > { %v572_v0 = vadd.f32 2.0, %v568_v62  ;;  %v592_v24 = vmul.f32 %v568_v62, %v548_v46 }
 0x1a0   : > { %v571_v1 = vadd.f32 2.0, %v567_v63  ;;  %v591_v28 = vmul.f32 %v567_v63, %v547_v47 }
 0x1a1   : > { %1198 = vrcp.f32 %v572_v0 }
 0x1a2   : > { %1200 = vrcp.f32 %v571_v1 }
 0x1aa   : > { %v1195_v2 = vpop.eup %1194 }
 0x1ab   : > { %v1197_v3 = vpop.eup %1196  ;;  %v578_v4 = vmul.f32 %v1195_v2, %v570_v57 }
 0x1ac   : > { %v577_v5 = vmul.f32 %v1197_v3, %v569_v60 }
 0x1ad   : > { %v582_v6 = vsub.f32 2.0, %v578_v4 }
 0x1ae   : > { %v581_v7 = vsub.f32 2.0, %v577_v5  ;;  %v1199_v8 = vpop.eup %1198  ;;  %v854_v5 = vld [vmem:[%s1532_s7] sm:$0x3] }
 0x1af   : > { %v1201_v9 = vpop.eup %1200  ;;  %v580_v10 = vmul.f32 %v1199_v8, %v572_v0  ;;  %v586_v12 = vmul.f32 %v1195_v2, %v582_v6  ;;  %v855_v6 = vld [vmem:[%s1533_s8] sm:$0x3] }
 0x1b0   : > { %v579_v14 = vmul.f32 %v1201_v9, %v571_v1  ;;  %v585_v15 = vmul.f32 %v1197_v3, %v581_v7 }
 0x1b1   : > { %v584_v16 = vsub.f32 2.0, %v580_v10  ;;  %v594_v25 = vmul.f32 %v590_v18, %v586_v12  ;;  %v902_v10 = vrot.slane %v854_v5, %v1327_v13  ;;  %v917_v18 = vrot.slane %v855_v6, %v1327_v13 }
 0x1b2   : > { %v583_v20 = vsub.f32 2.0, %v579_v14  ;;  %v593_v29 = vmul.f32 %v589_v22, %v585_v15 }
 0x1b3   : > { %v588_v23 = vmul.f32 %v1199_v8, %v584_v16  ;;  %v602_v32 = vsel %vm598_vm1, %v1461_v37, %v594_v25  ;;  %v913_v16 = vrot.slane %v855_v6, %v1322_v11 }
 0x1b4   : > { %v587_v27 = vmul.f32 %v1201_v9, %v583_v20  ;;  %v601_v35 = vsel %vm597_vm3, %v1463_v19, %v593_v29  ;;  %v898_v9 = vrot.slane %v854_v5, %v1322_v11 }
 0x1b5   : > { %v596_v30 = vmul.f32 %v592_v24, %v588_v23 }
 0x1b6   : > { %v595_v31 = vmul.f32 %v591_v28, %v587_v27 }
 0x1b7   : > { %v604_v33 = vsel %vm600_vm2, %v548_v46, %v596_v30 }
 0x1b8   : > { %v606_v34 = vpack.c.bf16 %v604_v33, %v602_v32  ;;  %v603_v36 = vsel %vm599_vm4, %v547_v47, %v595_v31 }
 0x1b9   : > { %v605_v17 = vpack.c.bf16 %v603_v36, %v601_v35 }
 0x1ba   : > { %843 = vmatprep.mubr.bf16.mxu1 %v606_v34 }
 0x1bb   : > { %844 = vmatmul.mubr.bf16.vlgmr.msra.gmra.mxu1 %v605_v17 }
 0x27b   : > { %v845_v37 = vpop.f32.mrf.mxu1 }
 0x27c   : > { %v846_v42 = vadd.f32 %v845_v37, %v644_v39 }
 0x27d   : > { %v847_v41 = vpop.f32.mrf.mxu1 }
 0x27e   : > { %v848_v43 = vadd.f32 %v847_v41, %v648_v40  ;;  %v862_v26 = vmul.f32 %v846_v42, %v846_v42 }
 0x27f   : > { %v849_v44 = vpop.f32.mrf.mxu1 }
 0x280   : > { %v856_v45 = vadd.f32 %v848_v43, %v846_v42  ;;  %v863_v46 = vmul.f32 %v848_v43, %v848_v43  ;;  %v850_v47 = vadd.f32 %v849_v44, %v644_v39 }
 0x281   : > { %v851_v19 = vpop.f32.mrf.mxu1 }
 0x282   : > { %v852_v21 = vadd.f32 %v851_v19, %v648_v40  ;;  %857 = vadd.xlane.f32.xlu0 %v856_v45  ;;  %v866_v49 = vadd.f32 %v863_v46, %v862_v26  ;;  %v864_v51 = vmul.f32 %v850_v47, %v850_v47 }
 0x284   : > { %v859_v48 = vadd.f32 %v852_v21, %v850_v47  ;;  %v865_v50 = vmul.f32 %v852_v21, %v852_v21 }
 0x286   : > { %860 = vadd.xlane.f32.xlu1 %v859_v48  ;;  %867 = vadd.xlane.f32.xlu0 %v866_v49  ;;  %v869_v52 = vadd.f32 %v865_v50, %v864_v51 }
 0x28a   : > { %870 = vadd.xlane.f32.xlu1 %v869_v52 }
 0x30b   : > { %v858_v53 = vpop.xlane.xlu0 %857 }
 0x30c   : > { %v872_v54 = vmul.f32 0.00390625, %v858_v53 }
 0x30e   : > { %v876_v58 = vmul.f32 %v872_v54, %v872_v54  ;;  %v882_v7 = vsub.f32 %v846_v42, %v872_v54  ;;  %v883_v8 = vsub.f32 %v848_v43, %v872_v54 }
 0x30f   : > { %v861_v55 = vpop.xlane.xlu1 %860  ;;  %v868_v56 = vpop.xlane.xlu0 %867 }
 0x310   : > { %v873_v57 = vmul.f32 0.00390625, %v861_v55  ;;  %v874_v59 = vmul.f32 0.00390625, %v868_v56 }
 0x312   : > { %v878_v60 = vsub.f32 %v874_v59, %v876_v58  ;;  %v877_v63 = vmul.f32 %v873_v57, %v873_v57  ;;  %v884_v20 = vsub.f32 %v850_v47, %v873_v57  ;;  %v885_v22 = vsub.f32 %v852_v21, %v873_v57 }
 0x313   : > { %v871_v61 = vpop.xlane.xlu1 %870 }
 0x314   : > { %v880_v62 = vmax.f32 %v878_v60, 0.0  ;;  %v875_v0 = vmul.f32 0.00390625, %v871_v61  ;;  %v980_v60 = vld [vmem:[%s1534_s9] sm:$0x3] }
 0x316   : > { %v886_v1 = vadd.f32 1e-05, %v880_v62  ;;  %v879_v2 = vsub.f32 %v875_v0, %v877_v63 }
 0x318   : > { %1202 = vrsqrt.f32 %v886_v1  ;;  %v881_v3 = vmax.f32 %v879_v2, 0.0 }
 0x31a   : > { %v887_v4 = vadd.f32 1e-05, %v881_v3 }
 0x31c   : > { %1204 = vrsqrt.f32 %v887_v4  ;;  %v985_v4 = vrot.slane %v980_v60, %v1322_v11 }
 0x325   : > { %v1203_v12 = vpop.eup %1202 }
 0x326   : > { %v890_v14 = vmul.f32 %v1203_v12, %v882_v7  ;;  %v891_v15 = vmul.f32 %v1203_v12, %v883_v8  ;;  %v989_v7 = vrot.slane %v980_v60, %v1327_v13 }
 0x328   : > { %v905_v23 = vmul.f32 %v898_v9, %v890_v14  ;;  %v906_v24 = vmul.f32 %v902_v10, %v891_v15 }
 0x329   : > { %v1205_v25 = vpop.eup %1204 }
 0x32a   : > { %v1488_v27 = vadd.f32 %v913_v16, %v905_v23  ;;  %v1490_v28 = vadd.f32 %v917_v18, %v906_v24  ;;  %v892_v29 = vmul.f32 %v1205_v25, %v884_v20  ;;  %v893_v30 = vmul.f32 %v1205_v25, %v885_v22 }
 0x32c   : > { %v924_v31 = vmin.f32 %v1488_v27, 20.0  ;;  %v925_v32 = vmin.f32 %v1490_v28, 20.0  ;;  %v907_v33 = vmul.f32 %v898_v9, %v892_v29  ;;  %v908_v34 = vmul.f32 %v902_v10, %v893_v30 }
 0x32d   : > { %vm972_vm5 = vcmp.gt.f32.partialorder %v1488_v27, 20.0  ;;  %vm973_vm6 = vcmp.gt.f32.partialorder %v1490_v28, 20.0 }
 0x32e   : > { %v928_v35 = vmul.f32 1.442695, %v924_v31  ;;  %v930_v36 = vmul.f32 1.442695, %v925_v32  ;;  %v1494_v17 = vadd.f32 %v913_v16, %v907_v33  ;;  %v1496_v38 = vadd.f32 %v917_v18, %v908_v34  ;;  %v1116_v32 = vld [vmem:[#allocation2] ss:$0 sm:$0xff] }
 0x330   : > { %1206 = vpow2.f32 %v928_v35  ;;  %v926_v39 = vmin.f32 %v1494_v17, 20.0  ;;  %v927_v40 = vmin.f32 %v1496_v38, 20.0  ;;  %vm974_vm7 = vcmp.gt.f32.partialorder %v1494_v17, 20.0 }
 0x331   : > { %1208 = vpow2.f32 %v930_v36  ;;  %vm975_vm8 = vcmp.gt.f32.partialorder %v1496_v38, 20.0 }
 0x332   : > { %v932_v37 = vmul.f32 1.442695, %v926_v39  ;;  %v934_v41 = vmul.f32 1.442695, %v927_v40 }
 0x334   : > { %1210 = vpow2.f32 %v932_v37 }
 0x335   : > { %1212 = vpow2.f32 %v934_v41 }
 0x33d   : > { %v1207_v42 = vpop.eup %1206 }
 0x33e   : > { %v1209_v43 = vpop.eup %1208  ;;  %v936_v44 = vadd.f32 2.0, %v1207_v42 }
 0x33f   : > { %v937_v45 = vadd.f32 2.0, %v1209_v43 }
 0x340   : > { %v940_v46 = vmul.f32 %v1207_v42, %v936_v44 }
 0x341   : > { %v941_v19 = vmul.f32 %v1209_v43, %v937_v45  ;;  %v1211_v47 = vpop.eup %1210 }
 0x342   : > { %v944_v21 = vadd.f32 2.0, %v940_v46  ;;  %v1213_v26 = vpop.eup %1212  ;;  %v938_v49 = vadd.f32 2.0, %v1211_v47  ;;  %v964_v0 = vmul.f32 %v940_v46, %v1488_v27 }
 0x343   : > { %v945_v48 = vadd.f32 2.0, %v941_v19  ;;  %v939_v50 = vadd.f32 2.0, %v1213_v26  ;;  %v965_v3 = vmul.f32 %v941_v19, %v1490_v28 }
 0x344   : > { %1214 = vrcp.f32 %v944_v21  ;;  %v942_v51 = vmul.f32 %v1211_v47, %v938_v49 }
 0x345   : > { %1216 = vrcp.f32 %v945_v48  ;;  %v943_v52 = vmul.f32 %v1213_v26, %v939_v50 }
 0x346   : > { %v946_v53 = vadd.f32 2.0, %v942_v51  ;;  %v966_v11 = vmul.f32 %v942_v51, %v1494_v17 }
 0x347   : > { %v947_v54 = vadd.f32 2.0, %v943_v52  ;;  %v967_v13 = vmul.f32 %v943_v52, %v1496_v38 }
 0x348   : > { %1218 = vrcp.f32 %v946_v53 }
 0x349   : > { %1220 = vrcp.f32 %v947_v54 }
 0x351   : > { %v1215_v55 = vpop.eup %1214 }
 0x352   : > { %v1217_v56 = vpop.eup %1216  ;;  %v952_v57 = vmul.f32 %v1215_v55, %v944_v21 }
 0x353   : > { %v953_v58 = vmul.f32 %v1217_v56, %v945_v48 }
 0x354   : > { %v956_v59 = vsub.f32 2.0, %v952_v57 }
 0x355   : > { %v957_v61 = vsub.f32 2.0, %v953_v58  ;;  %v1219_v62 = vpop.eup %1218 }
 0x356   : > { %v960_v63 = vmul.f32 %v1215_v55, %v956_v59  ;;  %v1221_v1 = vpop.eup %1220  ;;  %v954_v5 = vmul.f32 %v1219_v62, %v946_v53 }
 0x357   : > { %v961_v2 = vmul.f32 %v1217_v56, %v957_v61  ;;  %v955_v8 = vmul.f32 %v1221_v1, %v947_v54 }
 0x358   : > { %v968_v6 = vmul.f32 %v964_v0, %v960_v63  ;;  %v958_v10 = vsub.f32 2.0, %v954_v5 }
 0x359   : > { %v969_v9 = vmul.f32 %v965_v3, %v961_v2  ;;  %v959_v14 = vsub.f32 2.0, %v955_v8 }
 0x35a   : > { %v976_v12 = vsel %vm972_vm5, %v1488_v27, %v968_v6  ;;  %v962_v18 = vmul.f32 %v1219_v62, %v958_v10 }
 0x35b   : > { %v977_v15 = vsel %vm973_vm6, %v1490_v28, %v969_v9  ;;  %v992_v16 = vmul.f32 %v985_v4, %v976_v12  ;;  %v963_v22 = vmul.f32 %v1221_v1, %v959_v14 }
 0x35c   : > { %v993_v20 = vmul.f32 %v989_v7, %v977_v15  ;;  %v970_v23 = vmul.f32 %v966_v11, %v962_v18 }
 0x35d   : > { %v971_v25 = vmul.f32 %v967_v13, %v963_v22 }
 0x35e   : > { %v996_v24 = vadd.f32 %v993_v20, %v992_v16  ;;  %v978_v27 = vsel %vm974_vm7, %v1494_v17, %v970_v23 }
 0x35f   : > { %v979_v28 = vsel %vm975_vm8, %v1496_v38, %v971_v25  ;;  %v994_v29 = vmul.f32 %v985_v4, %v978_v27 }
 0x360   : > { %997 = vadd.xlane.f32.xlu0 %v996_v24  ;;  %v995_v30 = vmul.f32 %v989_v7, %v979_v28 }
 0x362   : > { %v999_v31 = vadd.f32 %v995_v30, %v994_v29 }
 0x364   : > { %1000 = vadd.xlane.f32.xlu1 %v999_v31 }
 0x3e9   : > { %v998_v33 = vpop.xlane.xlu0 %997 }
 0x3ea   : > { %v1009_v34 = vadd.f32 %v1116_v32, %v998_v33 }
 0x3ec   : > { %1012 = vst.msk [vmem:[%s390_s27] sm:$0xff] %vm1011_vm9, %v1009_v34 }
 0x3ed   : > { %v1001_v35 = vpop.xlane.xlu1 %1000 }
 0x3ee   : > { %v1010_v36 = vadd.f32 %v1116_v32, %v1001_v35 }
 0x3f0   : > { %1013 = vst.msk [vmem:[%s390_s27 + $0x8] sm:$0xff] %vm1011_vm9, %v1010_v36 }
 0x3f1 PF: > { %s23_s19 = sadd.s32 1, %s1228_s19  }
 0x3f2   : > { %p20_p4 = scmp.ge.s32.totalorder %s23_s19, 4  }
 0x3f4   :  { %22 = sbr.rel (!%p20_p4) target bundleno = 3 (0x3), region = 94 }

</bundles_post_ra>
